<compile_context>
chip_gen: v5e
topology: v5e:2x2
jax: 0.10.0
libtpu: 0.0.40
codegen_flags: <defaults>
</compile_context>

<pallas_src>
import jax
import jax.numpy as jnp
from jax.experimental import pallas as pl
from jax.experimental.pallas import tpu as pltpu


def _maskblock_kernel(x_ref, w_ref, b_ref, o_ref):
    """Per-tile 1x1 conv on the VPU.

    x_ref: (Cin, TS)   input tile, lanes = spatial (dense)
    w_ref: (Cout, Cin) full weight matrix (tiny, resident)
    b_ref: (Cout, 1)   bias column
    o_ref: (Cout, TS)  output tile, sublanes = Cout, lanes = spatial (dense)
    """
    cin = x_ref.shape[0]

    w = w_ref[...].astype(jnp.float32)   # (Cout, Cin)
    b = b_ref[...].astype(jnp.float32)   # (Cout, 1)

    # Cin rank-1 broadcast-FMAs (Cin is small and static -> fully unrolled;
    # stays on the VPU).  Each channel row is loaded straight from the ref as
    # a (1, TS) view (static ref slice == zero-cost view, no full-tile
    # materialize + value slicing), and the bias is folded into the first FMA
    # instead of a separate full-tile broadcast pass.
    x0 = x_ref[0:1, :].astype(jnp.float32)            # (1, TS)
    acc = b + w[:, 0:1] * x0                          # (Cout, TS)
    for ci in range(1, cin):
        xi = x_ref[ci:ci + 1, :].astype(jnp.float32)  # (1, TS)
        acc = acc + w[:, ci:ci + 1] * xi

    o_ref[...] = acc.astype(o_ref.dtype)


def _pick_spatial_tile(hw_pad, cin, cout, itemsize, n_batch,
                       lane_cap=65536, vmem_budget=12 * 1024 * 1024):
    """Pick the spatial (lane) tile size.

    Returns the largest multiple-of-128 divisor of `hw_pad` that is
      * <= lane_cap, and
      * small enough that the double-buffered per-step footprint
        (2 buffers x (Cin + Cout) rows x TS lanes x itemsize) fits the budget,
    then, if the resulting grid would have fewer than 2 steps, halves the tile
    so both TensorCores on v7x get work (no-op on v5e/v6e).
    """
    assert hw_pad % 128 == 0
    m = hw_pad // 128

    bytes_per_lane = 2 * (cin + cout) * itemsize
    cap = min(lane_cap, vmem_budget // bytes_per_lane)
    cap = max(128, (cap // 128) * 128)

    def largest_div(limit_lanes):
        best = 128
        for d in range(1, m + 1):
            if m % d == 0 and d * 128 <= limit_lanes:
                best = d * 128
        return best

    ts = largest_div(cap)

    # Guarantee >= 2 parallel grid steps when there is anything to split.
    if n_batch * (hw_pad // ts) < 2 and hw_pad > 128:
        ts = largest_div(hw_pad // 2)

    return ts


def maskblock_forward(x_nchw, weight, bias):
    """MaskBlock forward: 1x1 Conv2d (stride 1, no padding) + bias.

    x_nchw: (N, Cin, H, W); weight: (Cout, Cin, 1, 1); bias: (Cout,).
    Returns (N, Cout, H, W), same dtype as the input.
    """
    N, Cin, H, W = x_nchw.shape
    Cout = weight.shape[0]
    HW = H * W
    itemsize = jnp.dtype(x_nchw.dtype).itemsize

    # Pure reshape — NCHW already keeps spatial contiguous (lane dim).
    x3d = x_nchw.reshape(N, Cin, HW)
    w2d = weight.reshape(Cout, Cin)
    b2d = bias.reshape(Cout, 1)

    # Pad the spatial axis up to a multiple of 128 so every tile is
    # lane-dense and 128-aligned (tail is sliced off at the end).
    HW_pad = ((HW + 127) // 128) * 128
    if HW_pad != HW:
        x3d = jnp.pad(x3d, ((0, 0), (0, 0), (0, HW_pad - HW)))

    TS = _pick_spatial_tile(HW_pad, Cin, Cout, itemsize, N)
    grid = (N, HW_pad // TS)

    # VMEM limit from the real double-buffered tile footprint, with headroom
    # for spills and the (tiny) resident weight/bias blocks; kept below
    # v7x's 64 MiB physical VMEM.
    block_bytes = 2 * (Cin + Cout) * TS * itemsize
    vmem_limit = int(min(48 * 1024 * 1024,
                         max(32 * 1024 * 1024, 6 * block_bytes)))

    cost = pl.CostEstimate(
        flops=2 * N * HW_pad * Cin * Cout,
        transcendentals=0,
        bytes_accessed=(x3d.size + w2d.size + b2d.size + N * Cout * HW_pad)
        * itemsize,
    )

    out3d = pl.pallas_call(
        _maskblock_kernel,
        out_shape=jax.ShapeDtypeStruct((N, Cout, HW_pad), x_nchw.dtype),
        grid_spec=pltpu.PrefetchScalarGridSpec(
            num_scalar_prefetch=0,
            grid=grid,
            in_specs=[
                # Input: squeeze N, block (Cin, TS); Cin == full dim (legal),
                # TS is a multiple of 128.
                pl.BlockSpec((pl.Squeezed(), Cin, TS),
                             lambda n, s: (n, 0, s)),
                # Weight / bias: whole (tiny) arrays, same block every step
                # (constant index_map -> no re-DMA across steps).
                pl.BlockSpec((Cout, Cin), lambda n, s: (0, 0)),
                pl.BlockSpec((Cout, 1), lambda n, s: (0, 0)),
            ],
            out_specs=pl.BlockSpec((pl.Squeezed(), Cout, TS),
                                   lambda n, s: (n, 0, s)),
        ),
        compiler_params=pltpu.CompilerParams(
            dimension_semantics=("parallel", "parallel"),
            vmem_limit_bytes=vmem_limit,
        ),
        cost_estimate=cost,
    )(x3d, w2d, b2d)

    return out3d[:, :, :HW].reshape(N, Cout, H, W)


if __name__ == "__main__":
    # Small shapes consistent with the module (kernel_size=1 default):
    # N=2, Cin=4, Cout=8, H=W=16.
    N, Cin, Cout, H, W = 2, 4, 8, 16, 16

    key = jax.random.PRNGKey(0)
    kx, kw, kb = jax.random.split(key, 3)

    x = jax.random.normal(kx, (N, Cin, H, W), dtype=jnp.float32)

    # Deterministic kaiming_normal (fan_in, a=0): std = sqrt(2 / (Cin*k*k)).
    std = (2.0 / Cin) ** 0.5
    weight = std * jax.random.normal(kw, (Cout, Cin, 1, 1), dtype=jnp.float32)
    # Bias: deterministic values in the PyTorch default-init range.
    bound = 1.0 / (Cin ** 0.5)
    bias = bound * (2.0 * jax.random.uniform(kb, (Cout,), dtype=jnp.float32)
                    - 1.0)

    y = maskblock_forward(x, weight, bias)
    y = jax.block_until_ready(y)

    # Correctness check against plain-JAX reference (einsum == 1x1 conv).
    ref = (jnp.einsum("nchw,oc->nohw", x, weight.reshape(Cout, Cin))
           + bias.reshape(1, Cout, 1, 1))
    assert y.shape == (N, Cout, H, W)
    assert jnp.allclose(y, ref, atol=1e-5, rtol=1e-5)

    print("KERNEL_OK")
</pallas_src>

<mosaic_0001>
module attributes {stable_mosaic.version = 11 : i64} {
  func.func @_maskblock_kernel(%arg0: i32, %arg1: i32, %arg2: memref<1x4x256xf32, #tpu.memory_space<vmem>>, %arg3: memref<8x4xf32, #tpu.memory_space<vmem>>, %arg4: memref<8x1xf32, #tpu.memory_space<vmem>>, %arg5: memref<1x8x256xf32, #tpu.memory_space<vmem>>) attributes {dimension_semantics = [#tpu.dimension_semantics<parallel>, #tpu.dimension_semantics<parallel>], iteration_bounds = array<i64: 2, 1>, scalar_prefetch = 0 : i64, scratch_operands = 0 : i64, tpu.core_type = #tpu.core_type<tc>, window_params = [{transform_indices = @transform_0, window_bounds = array<i64: 1, 4, 256>}, {pipeline_mode = #tpu.pipeline_mode<synchronous>, transform_indices = @transform_1, window_bounds = array<i64: 8, 4>}, {pipeline_mode = #tpu.pipeline_mode<synchronous>, transform_indices = @transform_2, window_bounds = array<i64: 8, 1>}, {transform_indices = @transform_3, window_bounds = array<i64: 1, 8, 256>}]} {
    %c0 = arith.constant 0 : index
    %c0_0 = arith.constant 0 : index
    %0 = vector.load %arg3[%c0, %c0_0] : memref<8x4xf32, #tpu.memory_space<vmem>>, vector<8x4xf32>
    %c0_1 = arith.constant 0 : index
    %c0_2 = arith.constant 0 : index
    %1 = vector.load %arg4[%c0_1, %c0_2] : memref<8x1xf32, #tpu.memory_space<vmem>>, vector<8x1xf32>
    %c0_3 = arith.constant 0 : index
    %c0_4 = arith.constant 0 : index
    %c0_5 = arith.constant 0 : index
    %2 = vector.load %arg2[%c0_3, %c0_4, %c0_5] : memref<1x4x256xf32, #tpu.memory_space<vmem>>, vector<1x1x256xf32>
    %3 = vector.shape_cast %2 : vector<1x1x256xf32> to vector<1x256xf32>
    %4 = vector.extract_strided_slice %0 {offsets = [0, 0], sizes = [8, 1], strides = [1, 1]} : vector<8x4xf32> to vector<8x1xf32>
    %5 = vector.broadcast %4 : vector<8x1xf32> to vector<8x256xf32>
    %6 = vector.broadcast %3 : vector<1x256xf32> to vector<8x256xf32>
    %7 = arith.mulf %5, %6 : vector<8x256xf32>
    %8 = vector.broadcast %1 : vector<8x1xf32> to vector<8x256xf32>
    %9 = arith.addf %8, %7 : vector<8x256xf32>
    %c0_6 = arith.constant 0 : index
    %c1 = arith.constant 1 : index
    %c0_7 = arith.constant 0 : index
    %10 = vector.load %arg2[%c0_6, %c1, %c0_7] : memref<1x4x256xf32, #tpu.memory_space<vmem>>, vector<1x1x256xf32>
    %11 = vector.shape_cast %10 : vector<1x1x256xf32> to vector<1x256xf32>
    %12 = vector.extract_strided_slice %0 {offsets = [0, 1], sizes = [8, 1], strides = [1, 1]} : vector<8x4xf32> to vector<8x1xf32>
    %13 = vector.broadcast %12 : vector<8x1xf32> to vector<8x256xf32>
    %14 = vector.broadcast %11 : vector<1x256xf32> to vector<8x256xf32>
    %15 = arith.mulf %13, %14 : vector<8x256xf32>
    %16 = arith.addf %9, %15 : vector<8x256xf32>
    %c0_8 = arith.constant 0 : index
    %c2 = arith.constant 2 : index
    %c0_9 = arith.constant 0 : index
    %17 = vector.load %arg2[%c0_8, %c2, %c0_9] : memref<1x4x256xf32, #tpu.memory_space<vmem>>, vector<1x1x256xf32>
    %18 = vector.shape_cast %17 : vector<1x1x256xf32> to vector<1x256xf32>
    %19 = vector.extract_strided_slice %0 {offsets = [0, 2], sizes = [8, 1], strides = [1, 1]} : vector<8x4xf32> to vector<8x1xf32>
    %20 = vector.broadcast %19 : vector<8x1xf32> to vector<8x256xf32>
    %21 = vector.broadcast %18 : vector<1x256xf32> to vector<8x256xf32>
    %22 = arith.mulf %20, %21 : vector<8x256xf32>
    %23 = arith.addf %16, %22 : vector<8x256xf32>
    %c0_10 = arith.constant 0 : index
    %c3 = arith.constant 3 : index
    %c0_11 = arith.constant 0 : index
    %24 = vector.load %arg2[%c0_10, %c3, %c0_11] : memref<1x4x256xf32, #tpu.memory_space<vmem>>, vector<1x1x256xf32>
    %25 = vector.shape_cast %24 : vector<1x1x256xf32> to vector<1x256xf32>
    %26 = vector.extract_strided_slice %0 {offsets = [0, 3], sizes = [8, 1], strides = [1, 1]} : vector<8x4xf32> to vector<8x1xf32>
    %27 = vector.broadcast %26 : vector<8x1xf32> to vector<8x256xf32>
    %28 = vector.broadcast %25 : vector<1x256xf32> to vector<8x256xf32>
    %29 = arith.mulf %27, %28 : vector<8x256xf32>
    %30 = arith.addf %23, %29 : vector<8x256xf32>
    %c0_12 = arith.constant 0 : index
    %c0_13 = arith.constant 0 : index
    %c0_14 = arith.constant 0 : index
    %31 = vector.load %arg5[%c0_12, %c0_13, %c0_14] : memref<1x8x256xf32, #tpu.memory_space<vmem>>, vector<1x8x256xf32>
    %32 = vector.shape_cast %31 : vector<1x8x256xf32> to vector<8x256xf32>
    %33 = vector.shape_cast %30 : vector<8x256xf32> to vector<1x8x256xf32>
    tpu.vector_store %arg5[%c0_12, %c0_13, %c0_14], %33 {strides = array<i32>} : memref<1x8x256xf32, #tpu.memory_space<vmem>>, vector<1x8x256xf32>,
    return
  }
  func.func @transform_0(%arg0: i32, %arg1: i32) -> (i32, i32, i32) {
    %c0_i32 = arith.constant 0 : i32
    %c0_i32_0 = arith.constant 0 : i32
    return %arg0, %c0_i32, %arg1 : i32, i32, i32
  }
  func.func @transform_1(%arg0: i32, %arg1: i32) -> (i32, i32) {
    %c0_i32 = arith.constant 0 : i32
    %c0_i32_0 = arith.constant 0 : i32
    %c0_i32_1 = arith.constant 0 : i32
    return %c0_i32, %c0_i32_0 : i32, i32
  }
  func.func @transform_2(%arg0: i32, %arg1: i32) -> (i32, i32) {
    %c0_i32 = arith.constant 0 : i32
    %c0_i32_0 = arith.constant 0 : i32
    %c0_i32_1 = arith.constant 0 : i32
    return %c0_i32, %c0_i32_0 : i32, i32
  }
  func.func @transform_3(%arg0: i32, %arg1: i32) -> (i32, i32, i32) {
    %c0_i32 = arith.constant 0 : i32
    %c0_i32_0 = arith.constant 0 : i32
    return %arg0, %c0_i32, %arg1 : i32, i32, i32
  }
}

</mosaic_0001>

<bundles_post_ra>
// kernel: tpu_custom_call.1
= control target key start
LH: loop header
LB: loop body
LE: loop exit
PB: predicated region body
PF: predicated region fallthrough
CT: control target
= control target key end

     0   :  { %8 = vsyncpa [#allocation3], 0  ;;  %s657_s0 = inlined_call_operand.vmem [shape: f32[2,4,256], index: 0, kind: input, shape index: {}]   ;;  %s658_s1 = inlined_call_operand.vmem [shape: f32[8,4], index: 1, kind: input, shape index: {}]   ;;  %s659_s2 = inlined_call_operand.vmem [shape: f32[8,1], index: 2, kind: input, shape index: {}]   ;;  %s660_s3 = inlined_call_operand.hbm [shape: f32[2,8,256], index: 3, kind: output, shape index: {}]  }
   0x1   :  { %10 = vsyncpa [#allocation3 + $0x1], 0  ;;  %s550_s12 = smov 0   ;;  %s552_s13 = smov 0  }
   0x2   :  { %s554_s14 = smov 0   ;;  %s556_s15 = smov 0  }
   0x3   :  { %s558_s16 = smov 0   ;;  %s560_s17 = smov 0  }
   0x4 LB: > { %s364_s18 = sadd.s32 4294967295, %s524_s17   ;;  %s365_s19 = sadd.s32 4294967294, %s524_s17   ;;  %s524_s17 = sphi %s560_s17, %s16_s17   ;;  %s520_s16 = sphi %s558_s16, %s667_s16   ;;  %s516_s15 = sphi %s556_s15, %s666_s15   ;;  %s512_s14 = sphi %s554_s14, %s665_s14   ;;  %s508_s13 = sphi %s552_s13, %s664_s13   ;;  %s504_s12 = sphi %s550_s12, %s663_s12  }
   0x5   : > { %s28_s20 = sadd.s32 1, %s520_s16  ;;  %s107_s21 = sadd.s32 1, %s512_s14 }
   0x6   : > { %p30_p0 = scmp.ge.s32.totalorder %s28_s20, 2  ;;  %p117_p1 = scmp.ne.s32.totalorder %s512_s14, %s508_s13 }
   0x7   : > { %p118_p2 = scmp.eq.s32.totalorder %s364_s18, 1  ;;  %p123_p3 = scmp.ne.s32.totalorder %s508_s13, %s504_s12 }
   0x8   : > { %s669_s20 = smov (%p30_p0, %s28_s20), 0  ;;  %p124_p5 = scmp.eq.s32.totalorder %s365_s19, 1 }
   0x9   : > { %p590_p4 = por %p118_p2, %p117_p1  ;;  %s102_s23 = ssub.s32 %s520_s16, %s669_s20 }
   0xa   : > { %p368_p6 = scmp.ge.s32.totalorder %s524_s17, 1  ;;  %p105_p7 = scmp.eq.s32.totalorder %s102_s23, 0 }
   0xb   : > { %p597_p8 = por %p124_p5, %p123_p3  ;;  %p161_p9 = scmp.lt.s32.totalorder %s524_s17, 3 }
   0xc   : > { %s603_s25 = scalar_select %p105_p7, %s512_s14, %s107_s21  }
   0xd   : > { %p162_p10 = pnand %p368_p6, %p161_p9 }
   0xe   : > { %p190_p11 = scmp.lt.s32.totalorder (!%p162_p10), %s516_s15, 1  ;;  %s186_s8 = sand.u32 (!%p162_p10), 1, %s508_s13  }
   0xf   : > { %165 = sbr.rel (%p162_p10) target bundleno = 157 (0x9d), region = 32  ;;  %s369_s9 = sshll.u32 (!%p162_p10), %s186_s8, 4 }
  0x10   : > { %s381_s10 = sshll.u32 (!%p162_p10), %s516_s15, 4  ;;  %s270_s26 = scalar_lea.sflag (!%p162_p10), [#allocation3], %s186_s8 }
  0x11   : > { %s283_s19 = scalar_lea.hbm (!%p162_p10), %s660_s3, %s381_s10 }
  0x12   : > { %s287_s23 = sshll.u32 (!%p162_p10), %s283_s19, 4  ;;  %s288_s23 = int_to_ptr.hbm [resolvable:$true] %s287_s23 }
  0x13   : > { %s460_s27 = sshra.s32 (!%p162_p10), %s288_s23, 4  ;;  %s461_s27 = int_to_ptr.hbm [resolvable:$true] %s460_s27 }
  0x14   : > { %v200_v0 = vld [vmem:[%s658_s1] sm:$0xff]  ;;  %v526_v1 = vmov 0   ;;  %v527_v2 = vmov 1   ;;  %v528_v3 = vmov 3   ;;  %v529_v5 = vmov 2   ;;  %s191_s30 = scalar_select %p190_p11, %s516_s15, 1 }
  0x15   : > { %441 = vset.pattern.permute.xlu0 %v526_v1  ;;  %442 = vset.pattern.permute.xlu1 %v527_v2  ;;  %v201_v4 = vld [vmem:[%s659_s2] sm:$0xff]  ;;  %s188_s15 = scalar_lea.vmem [#allocation2], %s369_s9  ;;  %s462_s28 = scalar_lea.hbm %s461_s27, 16 }
  0x16   : > { %205 = vperm.xlu0 %441, %v200_v0   ;;  %225 = vperm.xlu1 %442, %v200_v0   ;;  %s380_s4 = sshll.u32 %s191_s30, 3  ;;  %s285_s21 = sshll.u32 %s188_s15, 4  ;;  %s286_s21 = int_to_ptr.vmem [resolvable:$true] %s285_s21 }
  0x17   : > { %444 = vset.pattern.permute.xlu2 %v528_v3  ;;  %s197_s7 = scalar_lea.vmem %s657_s0, %s380_s4  ;;  %p463_p12 = scmp.ne.s32.totalorder %s461_s27, %s462_s28 }
  0x18   : > { %255 = vperm.xlu2 %444, %v200_v0   ;;  %v202_v7 = vld [vmem:[%s197_s7] ss:$4 sm:$0x3]  ;;  %v372_v9 = vld [vmem:[%s197_s7 + $0x1] ss:$4 sm:$0x3]  ;;  %p467_p1 = scmp.lt.s32.totalorder %s461_s27, %s660_s3 }
  0x19   : > { %v209_v10 = vperm.slane %v202_v7, 0  ;;  %v210_v11 = vperm.slane %v202_v7, 1  ;;  %v373_v12 = vld [vmem:[%s197_s7 + $0x2] ss:$4 sm:$0x3]  ;;  %v229_v14 = vperm.slane %v372_v9, 0  ;;  %p464_p13 = pnand %p463_p12, %p590_p4 }
  0x1a   : > { %v374_v13 = vld [vmem:[%s197_s7 + $0x3] ss:$4 sm:$0x3]  ;;  %v230_v15 = vperm.slane %v372_v9, 1  ;;  %v244_v16 = vperm.slane %v373_v12, 0  ;;  %v245_v17 = vperm.slane %v373_v12, 1 }
  0x1b   : > { %v259_v20 = vperm.slane %v374_v13, 0  ;;  %v260_v21 = vperm.slane %v374_v13, 1  ;;  %p465_p0 = pneg %p464_p13  ;;  %s466_s4 = scalar_lea.hbm %s660_s3, 32 }
  0x1c   : > { %p468_p2 = scmp.lt.s32.totalorder %s466_s4, %s462_s28 }
  0x1e   : > { %217 = vperm.xlu0 %441, %v201_v4   ;;  %443 = vset.pattern.permute.xlu1 %v529_v5  ;;  %p469_p3 = por %p468_p2, %p467_p1 }
  0x1f   : > { %240 = vperm.xlu1 %443, %v200_v0  }
  0x20   : > { %p470_p5 = pnand %p469_p3, %p465_p0 }
  0x26   : > { %445 = vset.pattern.permute.xlu0 %v528_v3 }
  0x72   : > { %v256_v23 = vpop.permute.xlu2 %255 }
  0x73   : > { %v263_v33 = vmul.f32 %v259_v20, %v256_v23  ;;  %v264_v34 = vmul.f32 %v260_v21, %v256_v23 }
  0x88   : > { %v206_v6 = vpop.permute.xlu0 %205  ;;  %v226_v8 = vpop.permute.xlu1 %225 }
  0x89   : > { %v213_v18 = vmul.f32 %v209_v10, %v206_v6  ;;  %v214_v19 = vmul.f32 %v210_v11, %v206_v6  ;;  %v233_v24 = vmul.f32 %v229_v14, %v226_v8  ;;  %v234_v25 = vmul.f32 %v230_v15, %v226_v8 }
  0x90   : > { %v218_v22 = vpop.permute.xlu0 %217 }
  0x91   : > { %v220_v26 = vadd.f32 %v218_v22, %v213_v18  ;;  %v221_v27 = vadd.f32 %v218_v22, %v214_v19  ;;  %v241_v28 = vpop.permute.xlu1 %240 }
  0x92   : > { %v248_v29 = vmul.f32 %v244_v16, %v241_v28  ;;  %v249_v30 = vmul.f32 %v245_v17, %v241_v28 }
  0x93   : > { %v235_v31 = vadd.f32 %v233_v24, %v220_v26  ;;  %v236_v32 = vadd.f32 %v234_v25, %v221_v27 }
  0x95   : > { %v250_v35 = vadd.f32 %v248_v29, %v235_v31  ;;  %v251_v36 = vadd.f32 %v249_v30, %v236_v32 }
  0x97   : > { %v265_v37 = vadd.f32 %v263_v33, %v250_v35  ;;  %v266_v38 = vadd.f32 %v264_v34, %v251_v36 }
  0x99   : > { %267 = vst [vmem:[%s188_s15] sm:$0xff] %v265_v37 }
  0x9a   : > { %268 = vst [vmem:[%s188_s15 + $0x8] sm:$0xff] %v266_v38 }
  0x9b   : > { %473 = shalt.err (!%p470_p5)
}
  0x9c   : > { %382 = dma.vmem_to_hbm [thread:$0]  (%p590_p4), %s286_s21, 256, %s288_s23, %s270_s26  }
  0x9d PF: > { %p388_p6 = scmp.ge.s32.totalorder %s524_s17, 2  ;;  %s299_s7 = sand.u32 1, %s504_s12  }
  0x9e   : > { %s300_s8 = scalar_lea.sflag [#allocation3], %s299_s7 }
  0x9f   : > { %p385_p7 = pnand %p388_p6, %p597_p8 }
  0xa1   : > { %p386_p9 = pneg %p385_p7 }
  0xa3   : > { %499 = dma.done.wait (%p386_p9), %s300_s8, 256  }
  0xa4   : > { %501 = vsyncadd (%p386_p9), %s300_s8, 4294967040  ;;  %s16_s17 = sadd.s32 1, %s524_s17   ;;  %s663_s12 = smov %s508_s13 }
  0xa5   : > { %p13_p10 = scmp.ge.s32.totalorder %s16_s17, 4   ;;  %s664_s13 = smov %s512_s14 }
  0xa6   : > { %s665_s14 = smov %s603_s25  ;;  %s666_s15 = smov %s520_s16 }
  0xa7   : > { %s667_s16 = smov %s669_s20  ;;  %15 = sbr.rel (!%p13_p10) target bundleno = 4 (0x4), region = 70 }
  0xac   :  { %306 = vsyncpa [#allocation3], 1 }
  0xad   :  { %308 = vsyncpa [#allocation3 + $0x1], 1 }

</bundles_post_ra>
